<compile_context>
chip_gen: v7x
topology: tpu7x:2x2x1
jax: 0.10.0
libtpu: 0.0.40
codegen_flags: <defaults>
</compile_context>

<pallas_src>
import jax
import jax.numpy as jnp
from jax.experimental import pallas as pl
from jax.experimental.pallas import tpu as pltpu


def _maxpool2x2_kernel(x_ref, o_ref):
    # x_ref: (tr, 4*Wo) -- each row is [image row 2*ho | image row 2*ho+1].
    # o_ref: (tr, Wo)
    wo = o_ref.shape[-1]
    w2 = 2 * wo
    x = x_ref[...]

    # Vertical (H) reduction: two contiguous lane slices of the folded row.
    hmax = jnp.maximum(x[:, :w2], x[:, w2:])                     # (tr, 2*Wo)

    # Horizontal (W) reduction: even/odd lane selection via 0/1 matmuls.
    # Each output element is a dot product with exactly one 1.0, so the result
    # is exact for finite inputs (HIGHEST keeps f32 operands exact on the MXU).
    rows = jax.lax.broadcasted_iota(jnp.int32, (w2, wo), 0)
    cols = jax.lax.broadcasted_iota(jnp.int32, (w2, wo), 1)
    sel_even = (rows == 2 * cols).astype(x.dtype)
    sel_odd = (rows == 2 * cols + 1).astype(x.dtype)
    even = jnp.dot(hmax, sel_even, preferred_element_type=jnp.float32,
                   precision=jax.lax.Precision.HIGHEST)
    odd = jnp.dot(hmax, sel_odd, preferred_element_type=jnp.float32,
                  precision=jax.lax.Precision.HIGHEST)
    o_ref[...] = jnp.maximum(even, odd).astype(o_ref.dtype)


def _pick_block_rows(R, L, Wo, itemsize):
    """Rows per grid step: sublane multiple (or full R), sized for ~12 MiB."""
    SUB = 8
    # Double-buffered input + output blocks plus f32 temporaries in the body.
    bytes_per_row = (2 * L + 2 * Wo) * itemsize + 5 * Wo * 4
    budget = 12 * 1024 * 1024
    tr = max(SUB, (budget // max(bytes_per_row, 1)) // SUB * SUB)
    if tr >= R:
        if R <= 4 * SUB:
            return R                       # tiny problem: one full block
        # Split into ~2 blocks (sublane-rounded) so megacore / v7x TCs get work.
        tr = (((R + 1) // 2) + SUB - 1) // SUB * SUB
    return tr


def downsample(x):
    """MaxPool2d(kernel_size=2, stride=2) on an NCHW input (PyTorch semantics:
    odd spatial dims are floored)."""
    N, C, H, W = x.shape
    Ho, Wo = H // 2, W // 2
    assert Ho > 0 and Wo > 0, "MaxPool2d(2) needs H >= 2 and W >= 2"

    # Crop to even extents (no-op when H, W already even).
    x = x[:, :, : 2 * Ho, : 2 * Wo]

    # Zero-copy view: row r = (n, c, ho) holds image rows 2*ho and 2*ho+1
    # back to back -> (R, 4*Wo).  Pure metadata reshape for contiguous input.
    R = N * C * Ho
    L = 4 * Wo
    xf = x.reshape(R, L)

    itemsize = jnp.dtype(x.dtype).itemsize
    tr = _pick_block_rows(R, L, Wo, itemsize)
    grid = (pl.cdiv(R, tr),)

    y = pl.pallas_call(
        _maxpool2x2_kernel,
        out_shape=jax.ShapeDtypeStruct((R, Wo), x.dtype),
        grid_spec=pltpu.PrefetchScalarGridSpec(
            num_scalar_prefetch=0,
            grid=grid,
            in_specs=[pl.BlockSpec((tr, L), lambda i: (i, 0))],
            out_specs=pl.BlockSpec((tr, Wo), lambda i: (i, 0)),
        ),
        compiler_params=pltpu.CompilerParams(
            dimension_semantics=("parallel",),
            vmem_limit_bytes=32 * 1024 * 1024,
        ),
        cost_estimate=pl.CostEstimate(
            flops=R * Wo * (8 * Wo + 4),
            transcendentals=0,
            bytes_accessed=(R * L + R * Wo) * itemsize,
        ),
    )(xf)

    return y.reshape(N, C, Ho, Wo)


if __name__ == "__main__":
    key = jax.random.PRNGKey(0)
    N, C, H, W = 2, 4, 16, 16
    x = jax.random.normal(key, (N, C, H, W), dtype=jnp.float32)

    out = jax.block_until_ready(downsample(x))

    # Reference: plain JAX 2x2 max-pool.
    ref = jnp.max(x.reshape(N, C, H // 2, 2, W // 2, 2), axis=(3, 5))
    assert out.shape == (N, C, H // 2, W // 2), out.shape
    assert jnp.allclose(out, ref), "mismatch vs reference max-pool"

    print("KERNEL_OK")
</pallas_src>

<mosaic_0001>
module attributes {stable_mosaic.version = 11 : i64} {
  func.func @_maxpool2x2_kernel(%arg0: i32, %arg1: memref<32x32xf32, #tpu.memory_space<vmem>>, %arg2: memref<32x8xf32, #tpu.memory_space<vmem>>) attributes {dimension_semantics = [#tpu.dimension_semantics<parallel>], iteration_bounds = array<i64: 2>, scalar_prefetch = 0 : i64, scratch_operands = 0 : i64, tpu.core_type = #tpu.core_type<tc>, window_params = [{transform_indices = @transform_0, window_bounds = array<i64: 32, 32>}, {transform_indices = @transform_1, window_bounds = array<i64: 32, 8>}]} {
    %c0 = arith.constant 0 : index
    %c0_0 = arith.constant 0 : index
    %0 = vector.load %arg1[%c0, %c0_0] : memref<32x32xf32, #tpu.memory_space<vmem>>, vector<32x32xf32>
    %1 = vector.extract_strided_slice %0 {offsets = [0, 0], sizes = [32, 16], strides = [1, 1]} : vector<32x32xf32> to vector<32x16xf32>
    %2 = vector.extract_strided_slice %0 {offsets = [0, 16], sizes = [32, 16], strides = [1, 1]} : vector<32x32xf32> to vector<32x16xf32>
    %3 = arith.maximumf %1, %2 : vector<32x16xf32>
    %4 = tpu.iota {dimensions = array<i32: 0>} : vector<16x8xi32>
    %5 = tpu.iota {dimensions = array<i32: 1>} : vector<16x8xi32>
    %c2_i32 = arith.constant 2 : i32
    %6 = vector.broadcast %c2_i32 : i32 to vector<16x8xi32>
    %7 = arith.muli %6, %5 : vector<16x8xi32>
    %8 = arith.cmpi eq, %4, %7 : vector<16x8xi32>
    %9 = arith.extui %8 : vector<16x8xi1> to vector<16x8xi32>
    %10 = arith.sitofp %9 : vector<16x8xi32> to vector<16x8xf32>
    %c2_i32_1 = arith.constant 2 : i32
    %11 = vector.broadcast %c2_i32_1 : i32 to vector<16x8xi32>
    %12 = arith.muli %11, %5 : vector<16x8xi32>
    %c1_i32 = arith.constant 1 : i32
    %13 = vector.broadcast %c1_i32 : i32 to vector<16x8xi32>
    %14 = arith.addi %12, %13 : vector<16x8xi32>
    %15 = arith.cmpi eq, %4, %14 : vector<16x8xi32>
    %16 = arith.extui %15 : vector<16x8xi1> to vector<16x8xi32>
    %17 = arith.sitofp %16 : vector<16x8xi32> to vector<16x8xf32>
    %cst = arith.constant dense<0.000000e+00> : vector<32x8xf32>
    %18 = tpu.matmul %3, %10, %cst {dimension_numbers = #tpu.dot_dimension_numbers<[1], [0], [0], [1], [0, 0, 1, 1], [], []>, precision = #tpu.contract_precision<fp32>} : vector<32x16xf32>, vector<16x8xf32>, vector<32x8xf32> -> vector<32x8xf32>
    %cst_2 = arith.constant dense<0.000000e+00> : vector<32x8xf32>
    %19 = tpu.matmul %3, %17, %cst_2 {dimension_numbers = #tpu.dot_dimension_numbers<[1], [0], [0], [1], [0, 0, 1, 1], [], []>, precision = #tpu.contract_precision<fp32>} : vector<32x16xf32>, vector<16x8xf32>, vector<32x8xf32> -> vector<32x8xf32>
    %20 = arith.maximumf %18, %19 : vector<32x8xf32>
    %c0_3 = arith.constant 0 : index
    %c0_4 = arith.constant 0 : index
    %21 = vector.load %arg2[%c0_3, %c0_4] : memref<32x8xf32, #tpu.memory_space<vmem>>, vector<32x8xf32>
    tpu.vector_store %arg2[%c0_3, %c0_4], %20 {strides = array<i32>} : memref<32x8xf32, #tpu.memory_space<vmem>>, vector<32x8xf32>,
    return
  }
  func.func @transform_0(%arg0: i32) -> (i32, i32) {
    %c0_i32 = arith.constant 0 : i32
    %c0_i32_0 = arith.constant 0 : i32
    return %arg0, %c0_i32 : i32, i32
  }
  func.func @transform_1(%arg0: i32) -> (i32, i32) {
    %c0_i32 = arith.constant 0 : i32
    %c0_i32_0 = arith.constant 0 : i32
    return %arg0, %c0_i32 : i32, i32
  }
}

</mosaic_0001>

<bundles_post_ra>
// kernel: tpu_custom_call.1
= control target key start
LH: loop header
LB: loop body
LE: loop exit
PB: predicated region body
PF: predicated region fallthrough
CT: control target
= control target key end

     0   :  { %s1756_s6 = smov 0   ;;  %s1872_s0 = inlined_call_operand.vmem [shape: f32[64,32], index: 0, kind: input, shape index: {}]   ;;  %s1873_s1 = inlined_call_operand.vmem [shape: f32[64,8], index: 1, kind: output, shape index: {}]  }
   0x1 LB: > { %s1417_s7 = sadd.s32 4294967295, %s1741_s6   ;;  %p1421_p0 = scmp.ge.s32.totalorder %s1741_s6, 1  ;;  %s1741_s6 = sphi %s1756_s6, %s11_s6  }
   0x2   : > { %p88_p1 = scmp.lt.s32.totalorder %s1741_s6, 3 }
   0x4   : > { %p89_p2 = pnand %p1421_p0, %p88_p1 }
   0x5   : > { %s1422_s8 = sshll.u32 (!%p89_p2), %s1417_s7, 2  ;;  %v144_v0 = vlaneseq (!%p89_p2)  ;;  %v1743_v8 = vmov (!%p89_p2), 0.0   ;;  %s1744_s13 = smov (!%p89_p2), 112   ;;  %v1745_v16 = vmov (!%p89_p2), 1.0|1.0   ;;  %vm163_vm6 = vcmask (!%p89_p2), 130048  }
   0x6   : > { %92 = sbr.rel (%p89_p2) target bundleno = 409 (0x199), region = 24  ;;  %p109_p3 = scmp.lt.s32.totalorder (!%p89_p2), %s1422_s8, 7  ;;  %vm1356_vm7 = vcmask (!%p89_p2), 64512  }
   0x7   : > { %v145_v1 = vshrl.u32 (!%p89_p2), %v144_v0, 7  ;;  %v148_v2 = vand.u32 (!%p89_p2), 127, %v144_v0 }
   0x9   : > { %v146_v3 = vadd.s32 (!%p89_p2), 8, %v145_v1  ;;  %v149_v4 = vmul.u32 (!%p89_p2), 2, %v148_v2 }
   0xb   : > { %vm150_vm0 = vcmp.eq.s32.totalorder (!%p89_p2), %v145_v1, %v149_v4  ;;  %vm151_vm1 = vcmp.eq.s32.totalorder (!%p89_p2), %v146_v3, %v149_v4  ;;  %v156_v5 = vadd.s32 (!%p89_p2), 1, %v149_v4 }
   0xc   : > { %v1426_v9 = vsel (!%p89_p2), %vm150_vm0, 1.0, %v1743_v8  ;;  %v1427_v10 = vsel (!%p89_p2), %vm151_vm1, 1.0, %v1743_v8  ;;  %vm1772_vm2 = vmpackc.low (!%p89_p2), %vm151_vm1, %vm150_vm0 }
   0xd   : > { %s1879_s8 = smov (!%p109_p3, %s1422_s8), 7  ;;  %v285_v12 = vsub.f32 %v1426_v9, %v1426_v9  ;;  %v292_v13 = vsub.f32 %v1427_v10, %v1427_v10  ;;  %vm157_vm3 = vcmp.eq.s32.totalorder %v145_v1, %v156_v5  ;;  %1637 = vmatprep.subr.msk.bf16.mxu0 %vm1772_vm2, %v1745_v16  ;;  %vm158_vm4 = vcmp.eq.s32.totalorder %v146_v3, %v156_v5 }
   0xe   : > { %s1423_s9 = sshll.u32 %s1879_s8, 3  ;;  %v1428_v17 = vsel %vm157_vm3, 1.0, %v1743_v8  ;;  %v1429_v18 = vsel %vm158_vm4, 1.0, %v1743_v8  ;;  %vm1779_vm5 = vmpackc.low %vm158_vm4, %vm157_vm3  ;;  %1639 = vmatpush3.bf16.msk.msra.mxu0 %vm1772_vm2, %v1745_v16 }
   0xf   : > { %s112_s12 = scalar_lea.vmem %s1872_s0, %s1423_s9  ;;  %v873_v20 = vsub.f32 %v1428_v17, %v1428_v17  ;;  %v286_v21 = vand.u32 4294901760, %v285_v12  ;;  %v293_v22 = vand.u32 4294901760, %v292_v13  ;;  %1661 = vmatprep.subr.msk.bf16.mxu1 %vm1779_vm5, %v1745_v16  ;;  %v880_v23 = vsub.f32 %v1429_v18, %v1429_v18  ;;  %s118_s16 = scalar_lea.vmem %s1873_s1, %s1423_s9 }
  0x10   : > { %v122_v6 = vld [vmem:[%s112_s12 + $0x10] sm:$0xff]  ;;  %v120_v7 = vld [vmem:[%s112_s12] sm:$0xff]  ;;  %v123_v14 = vld [vmem:[%s112_s12 + $0x18] sm:$0xff]  ;;  %1663 = vmatpush3.bf16.msk.msra.mxu1 %vm1779_vm5, %v1745_v16  ;;  %v1644_v35 = vpack.c.bf16 %v292_v13, %v285_v12 }
  0x11   : > { %132 = vrot.lane.b32.xlu1 %v122_v6, %s1744_s13  ;;  %128 = vrot.lane.b32.xlu0 %v120_v7, %s1744_s13  ;;  %v121_v15 = vld [vmem:[%s112_s12 + $0x8] sm:$0xff]  ;;  %v287_v24 = vsub.f32 %v285_v12, %v286_v21  ;;  %v294_v25 = vsub.f32 %v292_v13, %v293_v22  ;;  %v874_v26 = vand.u32 4294901760, %v873_v20  ;;  %v881_v27 = vand.u32 4294901760, %v880_v23 }
  0x12   : > { %v1668_v36 = vpack.c.bf16 %v880_v23, %v873_v20  ;;  %v1792_v38 = vpack.c.bf16 %v293_v22, %v286_v21 }
  0x13   : > { %v288_v28 = vand.u32 4294901760, %v287_v24  ;;  %v295_v29 = vand.u32 4294901760, %v294_v25  ;;  %v875_v30 = vsub.f32 %v873_v20, %v874_v26  ;;  %v882_v31 = vsub.f32 %v880_v23, %v881_v27 }
  0x14   : > { %v1794_v39 = vpack.c.bf16 %v881_v27, %v874_v26 }
  0x15   : > { %134 = vrot.lane.b32.xlu1 %v123_v14, %s1744_s13  ;;  %130 = vrot.lane.b32.xlu0 %v121_v15, %s1744_s13  ;;  %v1640_v32 = vpack.c.bf16 %v295_v29, %v288_v28  ;;  %v876_v33 = vand.u32 4294901760, %v875_v30  ;;  %v883_v34 = vand.u32 4294901760, %v882_v31 }
  0x17   : > { %1641 = vmatprep.subr.bf16.mxu0 %v1640_v32  ;;  %v1664_v37 = vpack.c.bf16 %v883_v34, %v876_v33 }
  0x19   : > { %1665 = vmatprep.subr.bf16.mxu1 %v1664_v37 }
  0x83   : > { %v133_v40 = vpop.permute.xlu1 %132  ;;  %v129_v41 = vpop.permute.xlu0 %128 }
  0x84   : > { %v142_v42 = vmax.f32 %v122_v6, %v133_v40  ;;  %v140_v43 = vmax.f32 %v120_v7, %v129_v41 }
  0x86   : > { %v171_v44 = vsel %vm163_vm6, %v142_v42, 0  ;;  %v165_v45 = vsel %vm163_vm6, %v140_v43, 0 }
  0x87   : > { %v1798_v46 = vand.u32 4294901760, %v171_v44  ;;  %v1800_v47 = vand.u32 4294901760, %v165_v45  ;;  %v135_v48 = vpop.permute.xlu1 %134  ;;  %v131_v49 = vpop.permute.xlu0 %130 }
  0x88   : > { %v143_v50 = vmax.f32 %v123_v14, %v135_v48  ;;  %v141_v51 = vmax.f32 %v121_v15, %v131_v49 }
  0x89   : > { %v264_v52 = vsub.f32 %v171_v44, %v1798_v46  ;;  %v244_v53 = vsub.f32 %v165_v45, %v1800_v47 }
  0x8a   : > { %v174_v54 = vsel %vm163_vm6, %v143_v50, 0  ;;  %v168_v55 = vsel %vm163_vm6, %v141_v51, 0 }
  0x8b   : > { %v1806_v56 = vand.u32 4294901760, %v174_v54  ;;  %v1808_v57 = vand.u32 4294901760, %v168_v55  ;;  %v245_v58 = vand.u32 4294901760, %v244_v53  ;;  %v265_v62 = vand.u32 4294901760, %v264_v52 }
  0x8d   : > { %v274_v59 = vsub.f32 %v174_v54, %v1806_v56  ;;  %v254_v60 = vsub.f32 %v168_v55, %v1808_v57  ;;  %v246_v61 = vsub.f32 %v244_v53, %v245_v58  ;;  %v266_v3 = vsub.f32 %v264_v52, %v265_v62 }
  0x8f   : > { %v247_v63 = vand.u32 4294901760, %v246_v61  ;;  %v255_v0 = vand.u32 4294901760, %v254_v60  ;;  %v275_v1 = vand.u32 4294901760, %v274_v59  ;;  %v267_v6 = vand.u32 4294901760, %v266_v3 }
  0x91   : > { %1520 = vmatprep.mubr.f32.mxu0 %v247_v63  ;;  %1580 = vmatprep.mubr.f32.mxu1 %v247_v63  ;;  %v256_v2 = vsub.f32 %v254_v60, %v255_v0  ;;  %v276_v5 = vsub.f32 %v274_v59, %v275_v1 }
  0x93   : > { %v257_v4 = vand.u32 4294901760, %v256_v2  ;;  %v277_v7 = vand.u32 4294901760, %v276_v5 }
  0x95   : > { %1521 = vmatmul.mubr.f32.vlgmr.msra.gmra.mrb[0].mxu0 %v257_v4  ;;  %1581 = vmatmul.mubr.f32.vlgmr.msra.gmra.mrb[0].mxu1 %v257_v4 }
  0x96   : > { %1643 = vmatpush3.bf16.msra.mxu0 %v1640_v32  ;;  %1667 = vmatpush3.bf16.msra.mxu1 %v1664_v37 }
  0x97   : > { %1523 = vmatprep.mubr.f32.mxu0 %v267_v6  ;;  %1583 = vmatprep.mubr.f32.mxu1 %v267_v6 }
  0x98   : > { %1645 = vmatprep.subr.bf16.mxu0 %v1644_v35  ;;  %1669 = vmatprep.subr.bf16.mxu1 %v1668_v36 }
  0x99   : > { %1524 = vmatmul.mubr.f32.gmra.mrb[2].mxu0 %v277_v7  ;;  %1584 = vmatmul.mubr.f32.gmra.mrb[2].mxu1 %v277_v7 }
  0x9a   : > { %1530 = vmatprep.mubr.f32.mxu0 %v1800_v47  ;;  %1590 = vmatprep.mubr.f32.mxu1 %v1800_v47 }
  0x9d   : > { %1531 = vmatmul.mubr.f32.vlgmr.msra.gmra.mrb[0].mxu0 %v1808_v57  ;;  %1591 = vmatmul.mubr.f32.vlgmr.msra.gmra.mrb[0].mxu1 %v1808_v57 }
  0x9e   : > { %1647 = vmatpush3.bf16.msra.mxu0 %v1644_v35  ;;  %1671 = vmatpush3.bf16.msra.mxu1 %v1668_v36 }
  0x9f   : > { %1533 = vmatprep.mubr.f32.mxu0 %v1798_v46  ;;  %1593 = vmatprep.mubr.f32.mxu1 %v1798_v46 }
  0xa0   : > { %1649 = vmatprep.subr.msk.bf16.mxu0 %vm1772_vm2, %v1745_v16  ;;  %1673 = vmatprep.subr.msk.bf16.mxu1 %vm1779_vm5, %v1745_v16 }
  0xa1   : > { %1534 = vmatmul.mubr.f32.gmra.mrb[2].mxu0 %v1806_v56  ;;  %1594 = vmatmul.mubr.f32.gmra.mrb[2].mxu1 %v1806_v56 }
  0xa2   : > { %1540 = vmatprep.mubr.f32.mxu0 %v244_v53  ;;  %1600 = vmatprep.mubr.f32.mxu1 %v244_v53 }
  0xa5   : > { %1541 = vmatmul.mubr.f32.vlgmr.msra.gmra.mrb[0].mxu0 %v254_v60  ;;  %1601 = vmatmul.mubr.f32.vlgmr.msra.gmra.mrb[0].mxu1 %v254_v60 }
  0xa6   : > { %1651 = vmatpush3.bf16.msk.msra.mxu0 %vm1772_vm2, %v1745_v16  ;;  %1675 = vmatpush3.bf16.msk.msra.mxu1 %vm1779_vm5, %v1745_v16 }
  0xa7   : > { %1543 = vmatprep.mubr.f32.mxu0 %v264_v52  ;;  %1603 = vmatprep.mubr.f32.mxu1 %v264_v52 }
  0xa8   : > { %1653 = vmatprep.subr.bf16.mxu0 %v1792_v38  ;;  %1677 = vmatprep.subr.bf16.mxu1 %v1794_v39 }
  0xa9   : > { %1544 = vmatmul.mubr.f32.gmra.mrb[2].mxu0 %v274_v59  ;;  %1604 = vmatmul.mubr.f32.gmra.mrb[2].mxu1 %v274_v59 }
  0xaa   : > { %1550 = vmatprep.mubr.f32.mxu0 %v245_v58  ;;  %1610 = vmatprep.mubr.f32.mxu1 %v245_v58 }
  0xad   : > { %1551 = vmatmul.mubr.f32.vlgmr.msra.gmra.mrb[0].mxu0 %v255_v0  ;;  %1611 = vmatmul.mubr.f32.vlgmr.msra.gmra.mrb[0].mxu1 %v255_v0 }
  0xae   : > { %1655 = vmatpush3.bf16.msra.mxu0 %v1792_v38  ;;  %1679 = vmatpush3.bf16.msra.mxu1 %v1794_v39 }
  0xaf   : > { %1553 = vmatprep.mubr.f32.mxu0 %v265_v62  ;;  %1613 = vmatprep.mubr.f32.mxu1 %v265_v62 }
  0xb0   : > { %1657 = vmatprep.subr.msk.bf16.mxu0 %vm1772_vm2, %v1745_v16  ;;  %1681 = vmatprep.subr.msk.bf16.mxu1 %vm1779_vm5, %v1745_v16 }
  0xb1   : > { %1554 = vmatmul.mubr.f32.gmra.mrb[2].mxu0 %v275_v1  ;;  %1614 = vmatmul.mubr.f32.gmra.mrb[2].mxu1 %v275_v1 }
  0xb2   : > { %1560 = vmatprep.mubr.f32.mxu0 %v1800_v47  ;;  %1620 = vmatprep.mubr.f32.mxu1 %v1800_v47 }
  0xb5   : > { %1561 = vmatmul.mubr.f32.vlgmr.msra.gmra.mrb[0].mxu0 %v1808_v57  ;;  %1621 = vmatmul.mubr.f32.vlgmr.msra.gmra.mrb[0].mxu1 %v1808_v57 }
  0xb6   : > { %1659 = vmatpush3.bf16.msk.msra.mxu0 %vm1772_vm2, %v1745_v16  ;;  %1683 = vmatpush3.bf16.msk.msra.mxu1 %vm1779_vm5, %v1745_v16 }
  0xb7   : > { %1563 = vmatprep.mubr.f32.mxu0 %v1798_v46  ;;  %1623 = vmatprep.mubr.f32.mxu1 %v1798_v46 }
  0xb9   : > { %1564 = vmatmul.mubr.f32.gmra.mrb[2].mxu0 %v1806_v56  ;;  %1624 = vmatmul.mubr.f32.gmra.mrb[2].mxu1 %v1806_v56 }
  0xba   : > { %1570 = vmatprep.mubr.f32.mxu0 %v1800_v47  ;;  %1630 = vmatprep.mubr.f32.mxu1 %v1800_v47 }
  0xbd   : > { %1571 = vmatmul.mubr.f32.vlgmr.msra.gmra.mrb[0].mxu0 %v1808_v57  ;;  %1631 = vmatmul.mubr.f32.vlgmr.msra.gmra.mrb[0].mxu1 %v1808_v57 }
  0xbe   : > { %1573 = vmatprep.mubr.f32.mxu0 %v1798_v46  ;;  %1633 = vmatprep.mubr.f32.mxu1 %v1798_v46 }
  0xc1   : > { %1574 = vmatmul.mubr.f32.gmra.mrb[2].mxu0 %v1806_v56  ;;  %1634 = vmatmul.mubr.f32.gmra.mrb[2].mxu1 %v1806_v56 }
 0x190   : > { %v1572_v8 = vpop.f32.mrb[0].mxu0  ;;  %v1632_v9 = vpop.f32.mrb[0].mxu1 }
 0x191   : > { %v1353_v10 = vmax.f32 %v1572_v8, %v1632_v9  ;;  %v742_v11 = vpop.f32.mrb[1].mxu0  ;;  %v1330_v12 = vpop.f32.mrb[1].mxu1 }
 0x192   : > { %v1352_v13 = vmax.f32 %v742_v11, %v1330_v12 }
 0x193   : > { %1358 = vst.msk [vmem:[%s118_s16 + $0x8] sm:$0xff] %vm1356_vm7, %v1353_v10 }
 0x194   : > { %1357 = vst.msk [vmem:[%s118_s16] sm:$0xff] %vm1356_vm7, %v1352_v13  ;;  %v1575_v14 = vpop.f32.mrb[2].mxu0  ;;  %v1635_v15 = vpop.f32.mrb[2].mxu1 }
 0x195   : > { %v1355_v16 = vmax.f32 %v1575_v14, %v1635_v15  ;;  %v754_v17 = vpop.f32.mrb[3].mxu0  ;;  %v1342_v18 = vpop.f32.mrb[3].mxu1 }
 0x196   : > { %v1354_v19 = vmax.f32 %v754_v17, %v1342_v18 }
 0x197   : > { %1360 = vst.msk [vmem:[%s118_s16 + $0x18] sm:$0xff] %vm1356_vm7, %v1355_v16 }
 0x198   : > { %1359 = vst.msk [vmem:[%s118_s16 + $0x10] sm:$0xff] %vm1356_vm7, %v1354_v19 }
 0x199 PF: > { %s11_s6 = sadd.s32 1, %s1741_s6  }
 0x19a   : > { %p8_p4 = scmp.ge.s32.totalorder %s11_s6, 4  }
 0x19c   :  { %10 = sbr.rel (!%p8_p4) target bundleno = 1 (0x1), region = 54 }

</bundles_post_ra>
